<compile_context>
chip_gen: v7x
topology: tpu7x:2x2x1
jax: 0.10.0
libtpu: 0.0.40
codegen_flags: <defaults>
</compile_context>

<pallas_src>
import functools

import jax
import jax.numpy as jnp
from jax import lax
from jax.experimental import pallas as pl
from jax.experimental.pallas import tpu as pltpu


# Large finite negative used for masking.  Using -inf (as PyTorch does) makes
# the running max -inf for fully-masked blocks and produces NaN through
# exp(-inf - -inf); a finite value keeps the online-softmax recurrence NaN-free.
_NEG_BIG = -1e30


def _sdpa_flash_kernel(*refs, scale, has_mask):
    if has_mask:
        q_ref, k_ref, v_ref, mask_ref, o_ref, m_sc, l_sc, acc_sc = refs
    else:
        q_ref, k_ref, v_ref, o_ref, m_sc, l_sc, acc_sc = refs
        mask_ref = None

    kj = pl.program_id(3)

    @pl.when(kj == 0)
    def _init():
        m_sc[...] = jnp.full_like(m_sc, _NEG_BIG)
        l_sc[...] = jnp.zeros_like(l_sc)
        acc_sc[...] = jnp.zeros_like(acc_sc)

    q = q_ref[0, 0]                      # (tq, Dk)  native dtype
    k = k_ref[0, 0]                      # (tk, Dk)  native dtype
    v = v_ref[0, 0]                      # (tk, Dv)  native dtype

    # Fold 1/sqrt(Dk) into q (O(Sq*Dk) multiplies, not O(Sq*Sk)).
    q_scaled = q * jnp.asarray(scale, q.dtype)

    # scores = q_scaled @ k^T, contracting the last axes directly so the K
    # tile stays in its natural (Sk, Dk) layout (no XLU transpose).
    s = lax.dot_general(
        q_scaled, k,
        dimension_numbers=(((1,), (1,)), ((), ())),
        preferred_element_type=jnp.float32,
    )                                    # (tq, tk) f32

    if has_mask:
        # int8 mask: nonzero == masked out.
        s = jnp.where(mask_ref[0] != 0, _NEG_BIG, s)

    # Online (flash) softmax update, all in f32.
    m_prev = m_sc[...]                                        # (tq, 1)
    m_new = jnp.maximum(m_prev, jnp.max(s, axis=-1, keepdims=True))
    alpha = jnp.exp(m_prev - m_new)
    p = jnp.exp(s - m_new)                                    # (tq, tk)
    l_sc[...] = alpha * l_sc[...] + jnp.sum(p, axis=-1, keepdims=True)
    acc_sc[...] = alpha * acc_sc[...] + jnp.dot(
        p.astype(v.dtype), v, preferred_element_type=jnp.float32)
    m_sc[...] = m_new

    @pl.when(kj == pl.num_programs(3) - 1)
    def _finalize():
        # Deferred normalization: one reciprocal per query row on the EUP.
        inv = pl.reciprocal(l_sc[...], approx=False)
        o_ref[0, 0] = (acc_sc[...] * inv).astype(o_ref.dtype)


def _pick_tile(dim, candidates):
    """Largest candidate that evenly divides `dim`; otherwise the full dim."""
    for t in candidates:
        if t <= dim and dim % t == 0:
            return t
    return dim


def sdp_attention(q, k, v, mask=None):
    """Pallas implementation of SDPAttention.forward.

    q: [B, H, Sq, Dk], k: [B, H, Sk, Dk], v: [B, H, Sk, Dv]
    mask: optional [B, Sq, Sk] bool (True = masked out)
    """
    B, H, Sq, Dk = q.shape
    _, _, Sk, Dv = v.shape
    assert k.shape == (B, H, Sk, Dk)

    # Query/key tile sizes.  Bounded so per-step VMEM stays small even on
    # v7x's 64 MiB VMEM; at tiny shapes they fall back to the full extent.
    tq = _pick_tile(Sq, (256, 128, 64, 32, 16, 8))
    tk = _pick_tile(Sk, (512, 256, 128, 64, 32, 16, 8))

    scale = 1.0 / (Dk ** 0.5)
    has_mask = mask is not None
    grid = (B, H, Sq // tq, Sk // tk)

    in_specs = [
        pl.BlockSpec((1, 1, tq, Dk), lambda b, h, qi, kj: (b, h, qi, 0)),
        pl.BlockSpec((1, 1, tk, Dk), lambda b, h, qi, kj: (b, h, kj, 0)),
        pl.BlockSpec((1, 1, tk, Dv), lambda b, h, qi, kj: (b, h, kj, 0)),
    ]
    args = [q, k, v]
    if has_mask:
        in_specs.append(
            pl.BlockSpec((1, tq, tk), lambda b, h, qi, kj: (b, qi, kj)))
        args.append(mask.astype(jnp.int8))   # 1 byte/elem mask stream

    kernel = functools.partial(_sdpa_flash_kernel, scale=scale,
                               has_mask=has_mask)

    # TODO(synk): fully-masked query rows return uniform weights (finite -1e30
    # bias) instead of PyTorch's NaN; and for Dv < 128 the output store is not
    # lane-dense (fold heads into lanes if this matters for production shapes).
    return pl.pallas_call(
        kernel,
        out_shape=jax.ShapeDtypeStruct((B, H, Sq, Dv), q.dtype),
        grid_spec=pltpu.PrefetchScalarGridSpec(
            num_scalar_prefetch=0,
            grid=grid,
            in_specs=in_specs,
            out_specs=pl.BlockSpec((1, 1, tq, Dv),
                                   lambda b, h, qi, kj: (b, h, qi, 0)),
            scratch_shapes=[
                pltpu.VMEM((tq, 1), jnp.float32),    # running max m
                pltpu.VMEM((tq, 1), jnp.float32),    # running sum l
                pltpu.VMEM((tq, Dv), jnp.float32),   # output accumulator
            ],
        ),
        compiler_params=pltpu.CompilerParams(
            dimension_semantics=("parallel", "parallel", "parallel",
                                 "arbitrary"),
        ),
    )(*args)


def _reference(q, k, v, mask=None):
    # Pure-JAX reference mirroring the PyTorch module semantics (f32 math).
    k_dim = k.shape[-1]
    s = jnp.einsum("bhqd,bhkd->bhqk", q.astype(jnp.float32),
                   k.astype(jnp.float32)) / (k_dim ** 0.5)
    if mask is not None:
        s = jnp.where(mask[:, None, :, :], -jnp.inf, s)
    p = jax.nn.softmax(s, axis=-1)
    return jnp.einsum("bhqk,bhkd->bhqd", p, v.astype(jnp.float32))


if __name__ == "__main__":
    key = jax.random.PRNGKey(0)
    kq, kk, kv, km = jax.random.split(key, 4)

    # --- small case matching the module's implied shapes --------------------
    B, H, Sq, Sk, D = 2, 2, 8, 8, 32
    q = jax.random.normal(kq, (B, H, Sq, D), dtype=jnp.float32)
    k = jax.random.normal(kk, (B, H, Sk, D), dtype=jnp.float32)
    v = jax.random.normal(kv, (B, H, Sk, D), dtype=jnp.float32)
    mask = jax.random.uniform(km, (B, Sq, Sk)) < 0.3
    mask = mask.at[:, :, 0].set(False)   # keep >=1 unmasked key per row

    out_nomask = sdp_attention(q, k, v)
    jax.block_until_ready(out_nomask)
    ref_nomask = _reference(q, k, v)
    assert jnp.allclose(out_nomask, ref_nomask, atol=1e-4, rtol=1e-4)

    out_mask = sdp_attention(q, k, v, mask)
    jax.block_until_ready(out_mask)
    ref_mask = _reference(q, k, v, mask)
    assert jnp.allclose(out_mask, ref_mask, atol=1e-4, rtol=1e-4)

    # bf16 inputs exercise the native-dtype MXU path (loose tolerance vs f32).
    out_bf16 = sdp_attention(q.astype(jnp.bfloat16), k.astype(jnp.bfloat16),
                             v.astype(jnp.bfloat16), mask)
    jax.block_until_ready(out_bf16)
    assert jnp.allclose(out_bf16.astype(jnp.float32), ref_mask,
                        atol=1e-1, rtol=1e-1)

    # --- larger case exercising the multi-block flash (Sk) reduction --------
    k2q, k2k, k2v, k2m = jax.random.split(jax.random.PRNGKey(1), 4)
    B2, H2, Sq2, Sk2, D2 = 1, 2, 256, 1024, 64
    q2 = jax.random.normal(k2q, (B2, H2, Sq2, D2), dtype=jnp.float32)
    k2 = jax.random.normal(k2k, (B2, H2, Sk2, D2), dtype=jnp.float32)
    v2 = jax.random.normal(k2v, (B2, H2, Sk2, D2), dtype=jnp.float32)
    mask2 = jax.random.uniform(k2m, (B2, Sq2, Sk2)) < 0.3
    mask2 = mask2.at[:, :, 0].set(False)

    out2 = sdp_attention(q2, k2, v2, mask2)
    jax.block_until_ready(out2)
    ref2 = _reference(q2, k2, v2, mask2)
    assert jnp.allclose(out2, ref2, atol=1e-4, rtol=1e-4)

    print("KERNEL_OK")
</pallas_src>

<mosaic_0001>
module attributes {stable_mosaic.version = 11 : i64} {
  func.func @_sdpa_flash_kernel(%arg0: i32, %arg1: i32, %arg2: i32, %arg3: i32, %arg4: memref<1x1x8x32xf32, #tpu.memory_space<vmem>>, %arg5: memref<1x1x8x32xf32, #tpu.memory_space<vmem>>, %arg6: memref<1x1x8x32xf32, #tpu.memory_space<vmem>>, %arg7: memref<1x1x8x32xf32, #tpu.memory_space<vmem>>, %arg8: memref<8x1xf32, #tpu.memory_space<vmem>>, %arg9: memref<8x1xf32, #tpu.memory_space<vmem>>, %arg10: memref<8x32xf32, #tpu.memory_space<vmem>>) attributes {dimension_semantics = [#tpu.dimension_semantics<parallel>, #tpu.dimension_semantics<parallel>, #tpu.dimension_semantics<parallel>, #tpu.dimension_semantics<arbitrary>], iteration_bounds = array<i64: 2, 2, 1, 1>, scalar_prefetch = 0 : i64, scratch_operands = 3 : i64, tpu.core_type = #tpu.core_type<tc>, window_params = [{transform_indices = @transform_0, window_bounds = array<i64: 1, 1, 8, 32>}, {transform_indices = @transform_1, window_bounds = array<i64: 1, 1, 8, 32>}, {transform_indices = @transform_2, window_bounds = array<i64: 1, 1, 8, 32>}, {transform_indices = @transform_3, window_bounds = array<i64: 1, 1, 8, 32>}]} {
    %c0_i32 = arith.constant 0 : i32
    %0 = arith.cmpi eq, %arg3, %c0_i32 : i32
    %1 = arith.extui %0 : i1 to i32
    %c0_i32_0 = arith.constant 0 : i32
    %2 = arith.cmpi ne, %1, %c0_i32_0 : i32
    scf.if %2 {
      %cst_30 = arith.constant -1.000000e+30 : f32
      %37 = vector.broadcast %cst_30 : f32 to vector<8x1xf32>
      %c0_31 = arith.constant 0 : index
      %c0_32 = arith.constant 0 : index
      %38 = vector.load %arg8[%c0_31, %c0_32] : memref<8x1xf32, #tpu.memory_space<vmem>>, vector<8x1xf32>
      tpu.vector_store %arg8[%c0_31, %c0_32], %37 {strides = array<i32>} : memref<8x1xf32, #tpu.memory_space<vmem>>, vector<8x1xf32>,
      %cst_33 = arith.constant 0.000000e+00 : f32
      %39 = vector.broadcast %cst_33 : f32 to vector<8x1xf32>
      %c0_34 = arith.constant 0 : index
      %c0_35 = arith.constant 0 : index
      %40 = vector.load %arg9[%c0_34, %c0_35] : memref<8x1xf32, #tpu.memory_space<vmem>>, vector<8x1xf32>
      tpu.vector_store %arg9[%c0_34, %c0_35], %39 {strides = array<i32>} : memref<8x1xf32, #tpu.memory_space<vmem>>, vector<8x1xf32>,
      %cst_36 = arith.constant 0.000000e+00 : f32
      %41 = vector.broadcast %cst_36 : f32 to vector<8x32xf32>
      %c0_37 = arith.constant 0 : index
      %c0_38 = arith.constant 0 : index
      %42 = vector.load %arg10[%c0_37, %c0_38] : memref<8x32xf32, #tpu.memory_space<vmem>>, vector<8x32xf32>
      tpu.vector_store %arg10[%c0_37, %c0_38], %41 {strides = array<i32>} : memref<8x32xf32, #tpu.memory_space<vmem>>, vector<8x32xf32>,
    } else {
    }
    %c0 = arith.constant 0 : index
    %c0_1 = arith.constant 0 : index
    %c0_2 = arith.constant 0 : index
    %c0_3 = arith.constant 0 : index
    %3 = vector.load %arg4[%c0, %c0_1, %c0_2, %c0_3] : memref<1x1x8x32xf32, #tpu.memory_space<vmem>>, vector<1x1x8x32xf32>
    %4 = vector.shape_cast %3 : vector<1x1x8x32xf32> to vector<8x32xf32>
    %c0_4 = arith.constant 0 : index
    %c0_5 = arith.constant 0 : index
    %c0_6 = arith.constant 0 : index
    %c0_7 = arith.constant 0 : index
    %5 = vector.load %arg5[%c0_4, %c0_5, %c0_6, %c0_7] : memref<1x1x8x32xf32, #tpu.memory_space<vmem>>, vector<1x1x8x32xf32>
    %6 = vector.shape_cast %5 : vector<1x1x8x32xf32> to vector<8x32xf32>
    %c0_8 = arith.constant 0 : index
    %c0_9 = arith.constant 0 : index
    %c0_10 = arith.constant 0 : index
    %c0_11 = arith.constant 0 : index
    %7 = vector.load %arg6[%c0_8, %c0_9, %c0_10, %c0_11] : memref<1x1x8x32xf32, #tpu.memory_space<vmem>>, vector<1x1x8x32xf32>
    %8 = vector.shape_cast %7 : vector<1x1x8x32xf32> to vector<8x32xf32>
    %cst = arith.constant 0.176776692 : f32
    %9 = vector.broadcast %cst : f32 to vector<8x32xf32>
    %10 = arith.mulf %4, %9 : vector<8x32xf32>
    %cst_12 = arith.constant dense<0.000000e+00> : vector<8x8xf32>
    %11 = tpu.matmul %10, %6, %cst_12 {dimension_numbers = #tpu.dot_dimension_numbers<[1], [1], [0], [0], [0, 0, 1, 0], [], []>} : vector<8x32xf32>, vector<8x32xf32>, vector<8x8xf32> -> vector<8x8xf32>
    %c0_13 = arith.constant 0 : index
    %c0_14 = arith.constant 0 : index
    %12 = vector.load %arg8[%c0_13, %c0_14] : memref<8x1xf32, #tpu.memory_space<vmem>>, vector<8x1xf32>
    %cst_15 = arith.constant dense<0xFF800000> : vector<8xf32>
    %13 = vector.multi_reduction <maximumf>, %11, %cst_15 [1] : vector<8x8xf32> to vector<8xf32>
    %14 = vector.shape_cast %13 : vector<8xf32> to vector<8x1xf32>
    %15 = arith.maximumf %12, %14 : vector<8x1xf32>
    %16 = arith.subf %12, %15 : vector<8x1xf32>
    %17 = math.exp %16 : vector<8x1xf32>
    %18 = vector.broadcast %15 : vector<8x1xf32> to vector<8x8xf32>
    %19 = arith.subf %11, %18 : vector<8x8xf32>
    %20 = math.exp %19 : vector<8x8xf32>
    %c0_16 = arith.constant 0 : index
    %c0_17 = arith.constant 0 : index
    %21 = vector.load %arg9[%c0_16, %c0_17] : memref<8x1xf32, #tpu.memory_space<vmem>>, vector<8x1xf32>
    %22 = arith.mulf %17, %21 : vector<8x1xf32>
    %cst_18 = arith.constant dense<0.000000e+00> : vector<8xf32>
    %23 = vector.multi_reduction <add>, %20, %cst_18 [1] : vector<8x8xf32> to vector<8xf32>
    %24 = vector.shape_cast %23 : vector<8xf32> to vector<8x1xf32>
    %25 = arith.addf %22, %24 : vector<8x1xf32>
    %c0_19 = arith.constant 0 : index
    %c0_20 = arith.constant 0 : index
    %26 = vector.load %arg9[%c0_19, %c0_20] : memref<8x1xf32, #tpu.memory_space<vmem>>, vector<8x1xf32>
    tpu.vector_store %arg9[%c0_19, %c0_20], %25 {strides = array<i32>} : memref<8x1xf32, #tpu.memory_space<vmem>>, vector<8x1xf32>,
    %c0_21 = arith.constant 0 : index
    %c0_22 = arith.constant 0 : index
    %27 = vector.load %arg10[%c0_21, %c0_22] : memref<8x32xf32, #tpu.memory_space<vmem>>, vector<8x32xf32>
    %28 = vector.broadcast %17 : vector<8x1xf32> to vector<8x32xf32>
    %29 = arith.mulf %28, %27 : vector<8x32xf32>
    %cst_23 = arith.constant dense<0.000000e+00> : vector<8x32xf32>
    %30 = tpu.matmul %20, %8, %cst_23 {dimension_numbers = #tpu.dot_dimension_numbers<[1], [0], [0], [1], [0, 0, 1, 1], [], []>} : vector<8x8xf32>, vector<8x32xf32>, vector<8x32xf32> -> vector<8x32xf32>
    %31 = arith.addf %29, %30 : vector<8x32xf32>
    %c0_24 = arith.constant 0 : index
    %c0_25 = arith.constant 0 : index
    %32 = vector.load %arg10[%c0_24, %c0_25] : memref<8x32xf32, #tpu.memory_space<vmem>>, vector<8x32xf32>
    tpu.vector_store %arg10[%c0_24, %c0_25], %31 {strides = array<i32>} : memref<8x32xf32, #tpu.memory_space<vmem>>, vector<8x32xf32>,
    %c0_26 = arith.constant 0 : index
    %c0_27 = arith.constant 0 : index
    %33 = vector.load %arg8[%c0_26, %c0_27] : memref<8x1xf32, #tpu.memory_space<vmem>>, vector<8x1xf32>
    tpu.vector_store %arg8[%c0_26, %c0_27], %15 {strides = array<i32>} : memref<8x1xf32, #tpu.memory_space<vmem>>, vector<8x1xf32>,
    %c0_i32_28 = arith.constant 0 : i32
    %34 = arith.cmpi eq, %arg3, %c0_i32_28 : i32
    %35 = arith.extui %34 : i1 to i32
    %c0_i32_29 = arith.constant 0 : i32
    %36 = arith.cmpi ne, %35, %c0_i32_29 : i32
    scf.if %36 {
      %c0_30 = arith.constant 0 : index
      %c0_31 = arith.constant 0 : index
      %37 = vector.load %arg9[%c0_30, %c0_31] : memref<8x1xf32, #tpu.memory_space<vmem>>, vector<8x1xf32>
      %38 = tpu.reciprocal %37 : vector<8x1xf32> -> vector<8x1xf32>
      %c0_32 = arith.constant 0 : index
      %c0_33 = arith.constant 0 : index
      %39 = vector.load %arg10[%c0_32, %c0_33] : memref<8x32xf32, #tpu.memory_space<vmem>>, vector<8x32xf32>
      %40 = vector.broadcast %38 : vector<8x1xf32> to vector<8x32xf32>
      %41 = arith.mulf %39, %40 : vector<8x32xf32>
      %c0_34 = arith.constant 0 : index
      %c0_35 = arith.constant 0 : index
      %c0_36 = arith.constant 0 : index
      %c0_37 = arith.constant 0 : index
      %42 = vector.load %arg7[%c0_34, %c0_35, %c0_36, %c0_37] : memref<1x1x8x32xf32, #tpu.memory_space<vmem>>, vector<1x1x8x32xf32>
      %43 = vector.shape_cast %42 : vector<1x1x8x32xf32> to vector<8x32xf32>
      %44 = vector.shape_cast %41 : vector<8x32xf32> to vector<1x1x8x32xf32>
      tpu.vector_store %arg7[%c0_34, %c0_35, %c0_36, %c0_37], %44 {strides = array<i32>} : memref<1x1x8x32xf32, #tpu.memory_space<vmem>>, vector<1x1x8x32xf32>,
    } else {
    }
    return
  }
  func.func @transform_0(%arg0: i32, %arg1: i32, %arg2: i32, %arg3: i32) -> (i32, i32, i32, i32) {
    %c0_i32 = arith.constant 0 : i32
    %c0_i32_0 = arith.constant 0 : i32
    return %arg0, %arg1, %arg2, %c0_i32 : i32, i32, i32, i32
  }
  func.func @transform_1(%arg0: i32, %arg1: i32, %arg2: i32, %arg3: i32) -> (i32, i32, i32, i32) {
    %c0_i32 = arith.constant 0 : i32
    %c0_i32_0 = arith.constant 0 : i32
    return %arg0, %arg1, %arg3, %c0_i32 : i32, i32, i32, i32
  }
  func.func @transform_2(%arg0: i32, %arg1: i32, %arg2: i32, %arg3: i32) -> (i32, i32, i32, i32) {
    %c0_i32 = arith.constant 0 : i32
    %c0_i32_0 = arith.constant 0 : i32
    return %arg0, %arg1, %arg3, %c0_i32 : i32, i32, i32, i32
  }
  func.func @transform_3(%arg0: i32, %arg1: i32, %arg2: i32, %arg3: i32) -> (i32, i32, i32, i32) {
    %c0_i32 = arith.constant 0 : i32
    %c0_i32_0 = arith.constant 0 : i32
    return %arg0, %arg1, %arg2, %c0_i32 : i32, i32, i32, i32
  }
}

</mosaic_0001>

<bundles_post_ra>
// kernel: tpu_custom_call.1
= control target key start
LH: loop header
LB: loop body
LE: loop exit
PB: predicated region body
PF: predicated region fallthrough
CT: control target
= control target key end

     0   :  { %s1338_s0 = inlined_call_operand.hbm [shape: f32[2,2,8,32], index: 0, kind: input, shape index: {}]   ;;  %s1339_s1 = inlined_call_operand.hbm [shape: f32[2,2,8,32], index: 1, kind: input, shape index: {}]   ;;  %s1340_s2 = inlined_call_operand.hbm [shape: f32[2,2,8,32], index: 2, kind: input, shape index: {}]   ;;  %s1341_s3 = inlined_call_operand.hbm [shape: f32[2,2,8,32], index: 3, kind: output, shape index: {}]  }
   0x1   :  { %1351 = sst [smem:[#allocation21_spill]] %s1339_s1 }
   0x2   :  { %8 = vsyncpa [#allocation6], 0 }
   0x3   :  { %10 = vsyncpa [#allocation6 + $0x1], 0 }
   0x4   :  { %11 = vsyncpa [#allocation9], 0 }
   0x5   :  { %13 = vsyncpa [#allocation9 + $0x1], 0 }
   0x6   :  { %14 = vsyncpa [#allocation7], 0 }
   0x7   :  { %16 = vsyncpa [#allocation7 + $0x1], 0  ;;  %s1040_s12 = smov 0   ;;  %s1042_s13 = smov 0  }
   0x8   :  { %s1044_s14 = smov 0   ;;  %s1046_s15 = smov 0  }
   0x9   :  { %s1048_s16 = smov 0   ;;  %s1050_s17 = smov 0  }
   0xa   :  { %s1052_s18 = smov 0   ;;  %s1054_s19 = smov 0  }
   0xb LB: > { %1352 = sst [smem:[#allocation15_spill]] %s1002_s17  ;;  %s1081_s20 = sadd.s32 4294967295, %s1010_s19   ;;  %s1010_s19 = sphi %s1054_s19, %s22_s19   ;;  %s1006_s18 = sphi %s1052_s18, %s1379_s18   ;;  %s1002_s17 = sphi %s1050_s17, %s1378_s17   ;;  %s998_s16 = sphi %s1048_s16, %s1377_s16   ;;  %s994_s15 = sphi %s1046_s15, %s1376_s15   ;;  %s990_s14 = sphi %s1044_s14, %s1382_s14   ;;  %s986_s13 = sphi %s1042_s13, %s1381_s13   ;;  %s982_s12 = sphi %s1040_s12, %s1380_s12  }
   0xc   : > { %1353 = sst [smem:[#allocation16_spill]] %s1006_s18  ;;  %s679_s21 = sadd.s32 4294967294, %s1010_s19  }
   0xd   : > { %s44_s22 = sadd.s32 1, %s1002_s17  ;;  %s48_s23 = sadd.s32 1, %s1006_s18 }
   0xe   : > { %p46_p0 = scmp.ge.s32.totalorder %s44_s22, 2  ;;  %s59_s24 = sadd.s32 1, %s990_s14 }
   0xf   : > { %p66_p1 = scmp.ne.s32.totalorder %s990_s14, %s986_s13  ;;  %p67_p2 = scmp.eq.s32.totalorder %s1010_s19, 0 }
  0x10   : > { %s1384_s22 = smov (%p46_p0, %s44_s22), 0  ;;  %s1386_s23 = smov (!%p46_p0, %s48_s23), %s1006_s18 }
  0x11   : > { %1354 = sst [smem:[#allocation17_spill]] %s1384_s22  ;;  %s53_s25 = ssub.s32 %s1002_s17, %s1384_s22 }
  0x12   : > { %p1095_p3 = por %p67_p2, %p66_p1  ;;  %p50_p4 = scmp.ge.s32.totalorder %s1386_s23, 2 }
  0x13   : > { %p72_p5 = scmp.ne.s32.totalorder %s986_s13, %s982_s12  ;;  %p73_p6 = scmp.eq.s32.totalorder %s1081_s20, 0 }
  0x14   : > { %p160_p7 = scmp.eq.s32.totalorder %s1081_s20, 3  ;;  %s1388_s23 = smov (%p50_p4, %s1386_s23), 0 }
  0x15   : > { %1356 = sst [smem:[#allocation18_spill]] %s1388_s23  ;;  %p1105_p8 = por %p73_p6, %p72_p5 }
  0x16   : > { %p1109_p9 = por %p160_p7, %p66_p1  ;;  %s52_s29 = ssub.s32 %s1006_s18, %s1388_s23 }
  0x17   : > { %s1357_s27 = scalar_select %p1105_p8, 1, 0 }
  0x18   : > { %s1358_s28 = scalar_select %p1109_p9, 1, 0 }
  0x19   : > { %p166_p10 = scmp.eq.s32.totalorder %s679_s21, 3  ;;  %s54_s30 = sor.u32 %s53_s25, %s52_s29 }
  0x1a   : > { %p57_p11 = scmp.eq.s32.totalorder %s54_s30, 0  ;;  %p740_p13 = scmp.lt.s32.totalorder %s1010_s19, 4 }
  0x1b   : > { %p1115_p12 = por %p166_p10, %p72_p5  ;;  %s1342_s5 = sand.u32 1, %s990_s14  }
  0x1c   : > { %s1122_s6 = scalar_select %p57_p11, %s990_s14, %s59_s24  }
  0x1d   : > { %s1359_s4 = scalar_select %p1115_p12, 1, 0 }
  0x1e   : > { %1361 = sst [smem:[#allocation20_spill]] %s1122_s6  ;;  %s1126_s7 = sshll.u32 %s1342_s5, 3 }
  0x1f   : > { %1360 = sst [smem:[#allocation19_spill]] %s1359_s4  ;;  %s683_s8 = sshll.u32 %s1006_s18, 1 }
  0x20   : > { %s196_s9 = sadd.s32 %s1002_s17, %s683_s8  ;;  %p1132_p0 = pnand %p740_p13, %p1095_p3 }
  0x21   : > { %s1136_s11 = sshll.u32 %s196_s9, 7  ;;  %s207_s21 = sand.u32 1, %s1010_s19  }
  0x22   : > { %s1362_s10 = scalar_select %p1132_p0, 1, 0 }
  0x23   : > { %s1363_s1 = sld [smem:[#allocation21_spill]]  ;;  %s211_s30 = scalar_lea.vmem [#allocation8], %s1126_s7 }
  0x24   : > { %s221_s26 = sshll.u32 %s211_s30, 4  ;;  %s1150_s8 = scalar_lea.sflag [#allocation9], %s207_s21  ;;  %s1147_s26 = int_to_ptr.vmem [resolvable:$true] %s221_s26 }
  0x25   : > { %p1156_p4 = pneg %p1132_p0 }
  0x29   : > { %s1143_s24 = scalar_lea.hbm %s1363_s1, %s1136_s11  ;;  %s823_s30 = scalar_lea.hbm %s1363_s1, 512 }
  0x2a   : > { %s818_s9 = scalar_lea.hbm %s1143_s24, 128  ;;  %p824_p7 = scmp.lt.u32.totalorder %s1143_s24, %s1363_s1 }
  0x2b   : > { %p819_p3 = scmp.ne.s32.totalorder %s1143_s24, %s818_s9  ;;  %p825_p10 = scmp.lt.u32.totalorder %s823_s30, %s818_s9 }
  0x2c   : > { %p827_p13 = scmp.lt.u32.totalorder %s818_s9, %s1143_s24 }
  0x2d   : > { %p821_p5 = pnand %p1156_p4, %p819_p3  ;;  %p826_p11 = por %p825_p10, %p824_p7 }
  0x2f   : > { %p822_p6 = pneg %p821_p5  ;;  %p828_p1 = por %p827_p13, %p826_p11 }
  0x31   : > { %p829_p2 = pnand %p828_p1, %p822_p6 }
  0x33   : > { %832 = shalt.err (!%p829_p2)
}
  0x34   : > { %s833_s21 = scalar_lea.vmem %s1147_s26, 128  ;;  %s1012_s25 = smov [#allocation8]  }
  0x35   : > { %p834_p3 = scmp.ne.s32.totalorder %s1147_s26, %s833_s21  ;;  %s838_s29 = sshll.u32 %s1012_s25, 4  ;;  %s839_s29 = int_to_ptr.vmem [resolvable:$false] %s838_s29 }
  0x36   : > { %s840_s22 = scalar_lea.vmem %s839_s29, 256  ;;  %p841_p9 = scmp.lt.s32.totalorder %s1147_s26, %s839_s29 }
  0x37   : > { %p836_p5 = pnand %p834_p3, %p1156_p4  ;;  %p842_p8 = scmp.lt.s32.totalorder %s840_s22, %s833_s21 }
  0x39   : > { %p837_p12 = pneg %p836_p5  ;;  %p843_p7 = por %p842_p8, %p841_p9 }
  0x3b   : > { %p844_p10 = pnand %p843_p7, %p837_p12 }
  0x3d   : > { %847 = shalt.err (!%p844_p10)
}
  0x3e   : > { %732 = dma.hbm_to_vmem [thread:$0]  (!%p1132_p0), %s1143_s24, 128, %s1147_s26, %s1150_s8  }
  0x3f   : > { %p1365_p1 = scmp.lt.s32.totalorder %s1010_s19, 5  ;;  %p1366_p2 = scmp.ge.s32.totalorder %s1010_s19, 1 }
  0x40   : > { %s1192_s21 = scalar_lea.hbm %s1338_s0, %s1136_s11  ;;  %s190_s25 = scalar_lea.vmem [#allocation5], %s1126_s7 }
  0x41   : > { %p1184_p6 = pnand %p1366_p2, %p1365_p1  ;;  %s200_s29 = sshll.u32 %s190_s25, 4  ;;  %s1195_s29 = int_to_ptr.vmem [resolvable:$true] %s200_s29 }
  0x42   : > { %s1201_s22 = scalar_lea.hbm %s1340_s2, %s1136_s11  ;;  %s1368_s1 = sand.u32 1, %s990_s14  }
  0x43   : > { %s1367_s23 = scalar_select %p1184_p6, 1, 0 }
  0x44   : > { %s187_s18 = scalar_lea.sflag [#allocation6], %s1368_s1  ;;  %s848_s17 = scalar_lea.hbm %s1192_s21, 128 }
  0x45   : > { %p849_p8 = scmp.ne.s32.totalorder %s1192_s21, %s848_s17  ;;  %s853_s6 = scalar_lea.hbm %s1338_s0, 512 }
  0x46   : > { %p854_p11 = scmp.lt.u32.totalorder %s1192_s21, %s1338_s0  ;;  %p855_p13 = scmp.lt.u32.totalorder %s853_s6, %s848_s17 }
  0x47   : > { %p851_p9 = pnand %p849_p8, %p1156_p4  ;;  %p857_p5 = scmp.lt.u32.totalorder %s848_s17, %s1192_s21 }
  0x48   : > { %p856_p3 = por %p855_p13, %p854_p11 }
  0x49   : > { %p852_p12 = pneg %p851_p9 }
  0x4a   : > { %p858_p7 = por %p857_p5, %p856_p3 }
  0x4c   : > { %p859_p10 = pnand %p858_p7, %p852_p12 }
  0x4e   : > { %862 = shalt.err (!%p859_p10)
}
  0x4f   : > { %s863_s1 = scalar_lea.vmem %s1195_s29, 128  ;;  %s1013_s11 = smov [#allocation5]  }
  0x50   : > { %p864_p1 = scmp.ne.s32.totalorder %s1195_s29, %s863_s1  ;;  %s868_s24 = sshll.u32 %s1013_s11, 4  ;;  %s869_s24 = int_to_ptr.vmem [resolvable:$false] %s868_s24 }
  0x51   : > { %s870_s4 = scalar_lea.vmem %s869_s24, 256  ;;  %p871_p9 = scmp.lt.s32.totalorder %s1195_s29, %s869_s24 }
  0x52   : > { %p866_p2 = pnand %p864_p1, %p1156_p4  ;;  %p872_p6 = scmp.lt.s32.totalorder %s870_s4, %s863_s1 }
  0x54   : > { %p867_p8 = pneg %p866_p2  ;;  %p873_p11 = por %p872_p6, %p871_p9 }
  0x56   : > { %p874_p13 = pnand %p873_p11, %p867_p8 }
  0x58   : > { %877 = shalt.err (!%p874_p13)
}
  0x59   : > { %729 = dma.hbm_to_vmem [thread:$0]  (!%p1132_p0), %s1192_s21, 128, %s1195_s29, %s187_s18  }
  0x5a   : > { %s232_s17 = scalar_lea.vmem [#allocation10], %s1126_s7  ;;  %s878_s26 = scalar_lea.hbm %s1201_s22, 128 }
  0x5b   : > { %s242_s6 = sshll.u32 %s232_s17, 4  ;;  %p879_p12 = scmp.ne.s32.totalorder %s1201_s22, %s878_s26  ;;  %s243_s6 = int_to_ptr.vmem [resolvable:$true] %s242_s6 }
  0x5c   : > { %s883_s25 = scalar_lea.hbm %s1340_s2, 512  ;;  %p884_p5 = scmp.lt.u32.totalorder %s1201_s22, %s1340_s2 }
  0x5d   : > { %p881_p6 = pnand %p879_p12, %p1156_p4  ;;  %p885_p7 = scmp.lt.u32.totalorder %s883_s25, %s878_s26 }
  0x5e   : > { %p887_p1 = scmp.lt.u32.totalorder %s878_s26, %s1201_s22 }
  0x5f   : > { %p882_p3 = pneg %p881_p6  ;;  %p886_p10 = por %p885_p7, %p884_p5 }
  0x61   : > { %p888_p2 = por %p887_p1, %p886_p10 }
  0x63   : > { %p889_p8 = pnand %p888_p2, %p882_p3 }
  0x65   : > { %892 = shalt.err (!%p889_p8)
}
  0x66   : > { %s893_s18 = scalar_lea.vmem %s243_s6, 128  ;;  %s1014_s7 = smov [#allocation10]  }
  0x67   : > { %p894_p9 = scmp.ne.s32.totalorder %s243_s6, %s893_s18  ;;  %s898_s21 = sshll.u32 %s1014_s7, 4  ;;  %s899_s21 = int_to_ptr.vmem [resolvable:$false] %s898_s21 }
  0x68   : > { %s900_s29 = scalar_lea.vmem %s899_s21, 256  ;;  %p901_p12 = scmp.lt.s32.totalorder %s243_s6, %s899_s21 }
  0x69   : > { %p896_p11 = pnand %p894_p9, %p1156_p4  ;;  %p902_p6 = scmp.lt.s32.totalorder %s900_s29, %s893_s18 }
  0x6b   : > { %p897_p13 = pneg %p896_p11  ;;  %p903_p0 = por %p902_p6, %p901_p12 }
  0x6d   : > { %p904_p5 = pnand %p903_p0, %p897_p13 }
  0x6f   : > { %907 = shalt.err (!%p904_p5)
}
  0x70   : > { %p1369_p7 = scmp.ne.s32.totalorder %s1362_s10, 0  ;;  %p1370_p3 = scmp.ne.s32.totalorder %s1367_s23, 0 }
  0x71   : > { %s1248_s5 = sand.u32 (!%p1370_p3), 1, %s986_s13   ;;  %p1371_p0 = scmp.ne.s32.totalorder (!%p1370_p3), %s1357_s27, 0 }
  0x72   : > { %735 = dma.hbm_to_vmem [thread:$0]  (!%p1369_p7), %s1201_s22, 128, %s243_s6, %s1150_s8  }
  0x73   : > { %251 = sbr.rel (%p1370_p3) target bundleno = 940 (0x3ac), region = 32  ;;  %s1251_s24 = sshll.u32 (!%p1370_p3), %s1248_s5, 3 }
  0x74   : > { %s254_s4 = scalar_lea.sflag (!%p1370_p3), [#allocation6], %s1248_s5  ;;  %s257_s17 = scalar_lea.vmem (!%p1370_p3), [#allocation5], %s1251_s24 }
  0x7a   : > { %969 = dma.done.wait (%p1371_p0), %s254_s4, 128  }
  0x7b   : > { %971 = vsyncadd (%p1371_p0), %s254_s4, 4294967168  ;;  %s262_s10 = sand.u32 1, %s1081_s20   ;;  %s266_s23 = scalar_lea.vmem [#allocation8], %s1251_s24 }
  0x7c   : > { %s263_s8 = scalar_lea.sflag [#allocation9], %s262_s10 }
  0x7d   : > { %973 = dma.done.wait (%p1371_p0), %s263_s8, 256  }
  0x7e   : > { %975 = vsyncadd (%p1371_p0), %s263_s8, 4294967040  ;;  %vm315_vm0 = vcmask 261120   ;;  %v1015_v0 = vmov 0.0   ;;  %vm1016_vm1 = vmmov 0   ;;  %v318_v1 = vld [vmem:[%s266_s23] sm:$0xff]  ;;  %v317_v2 = vld [vmem:[%s257_s17] sm:$0xff] }
  0x7f   : > { %708 = vmatprep.subr.mxu0 %v1015_v0  ;;  %316 = vst.msk [vmem:[#allocation4] sm:$0xff] %vm315_vm0, %v1015_v0  ;;  %710 = vmatprep.mubr.msk.f32.mxu0 %vm1016_vm1, %v1015_v0  ;;  %v320_v3 = vmul.f32 0.17677669, %v317_v2  ;;  %vm312_vm2 = vcmask 7168   ;;  %v1017_v4 = vmov -1e+30  }
  0x80   : > { %713 = vmatprep.subr.mxu1 %v1015_v0  ;;  %715 = vmatprep.mubr.msk.f32.mxu1 %vm1016_vm1, %v1015_v0  ;;  %313 = vst.msk [vmem:[#allocation2] sm:$0xff] %vm312_vm2, %v1017_v4  ;;  %314 = vst.msk [vmem:[#allocation3] sm:$0xff] %vm312_vm2, %v1015_v0  ;;  %vm399_vm3 = vcmask 64512   ;;  %v1018_v8 = vmov 0   ;;  %s275_s20 = scalar_lea.vmem [#allocation10], %s1251_s24  ;;  %s700_s27 = sshll.u32 %s998_s16, 1 }
  0x81   : > { %709 = vmatpush3.xpose.msk.msra.mxu0 %vm315_vm0, %v318_v1  ;;  %810 = vset.pattern.permute.xlu0 %v1018_v8  ;;  %v319_v13 = vld [vmem:[%s275_s20] sm:$0xff]  ;;  %s532_s22 = sadd.s32 %s994_s15, %s700_s27  ;;  %s307_s26 = scalar_lea.vmem [#allocation11], %s1251_s24 }
  0x82   : > { %811 = vset.pattern.permute.xlu1 %v1018_v8  ;;  %714 = vmatpush3.msra.mxu1 %v319_v13  ;;  %s701_s6 = sshll.u32 %s532_s22, 7  ;;  %s536_s9 = sshll.u32 %s307_s26, 4  ;;  %s1285_s9 = int_to_ptr.vmem [resolvable:$true] %s536_s9 }
  0x83   : > { %s1283_s1 = scalar_lea.hbm %s1341_s3, %s701_s6  ;;  %s520_s16 = scalar_lea.sflag [#allocation7], %s1248_s5 }
  0x84   : > { %711 = vmatmul.mubr.msk.f32.vlgmr.msra.gmra.mrb[0].mxu0 %vm315_vm0, %v320_v3  ;;  %s908_s15 = scalar_lea.vmem %s1285_s9, 128  ;;  %p1372_p10 = scmp.ne.s32.totalorder %s1358_s28, 0 }
  0x85   : > { %p909_p4 = scmp.ne.s32.totalorder %s1285_s9, %s908_s15  ;;  %s1019_s11 = smov [#allocation11]  }
  0x86   : > { %v423_v27 = vld [vmem:[#allocation4] sm:$0xff]  ;;  %s912_s18 = sshll.u32 %s1019_s11, 4  ;;  %s913_s18 = int_to_ptr.vmem [resolvable:$false] %s912_s18 }
  0x87   : > { %v398_v9 = vld [vmem:[#allocation2] sm:$0xff]  ;;  %v415_v21 = vld [vmem:[#allocation3] sm:$0xff]  ;;  %p910_p1 = pnand %p909_p4, %p1372_p10  ;;  %s914_s7 = scalar_lea.vmem %s913_s18, 256 }
  0x88   : > { %p915_p8 = scmp.lt.s32.totalorder %s1285_s9, %s913_s18  ;;  %p916_p9 = scmp.lt.s32.totalorder %s914_s7, %s908_s15 }
  0x89   : > { %p911_p2 = pneg %p910_p1 }
  0x8a   : > { %p917_p11 = por %p916_p9, %p915_p8 }
  0x8c   : > { %p918_p13 = pnand %p917_p11, %p911_p2 }
 0x157   : > { %v394_v5 = vpop.f32.mrb[0].mxu0 }
 0x158   : > { %v712_v6 = vpop.f32.mrb[1].mxu0  ;;  %v400_v7 = vsel %vm399_vm3, %v394_v5, -inf }
 0x159   : > { %401 = vmax.xlane.f32.xlu0 %v400_v7 }
 0x1e6   : > { %v402_v10 = vpop.xlane.xlu0 %401 }
 0x1e7   : > { %v403_v11 = vmax.f32 %v398_v9, %v402_v10 }
 0x1e9   : > { %v404_v12 = vsub.f32 %v398_v9, %v403_v11  ;;  %505 = vst.msk [vmem:[#allocation2] sm:$0xff] %vm312_vm2, %v403_v11  ;;  %409 = vperm.xlu0 %810, %v403_v11  }
 0x1eb   : > { %v405_v19 = vmul.f32 1.442695, %v404_v12 }
 0x268   : > { %v410_v14 = vpop.permute.xlu0 %409 }
 0x269   : > { %v412_v15 = vsub.f32 %v394_v5, %v410_v14 }
 0x26b   : > { %v413_v16 = vmul.f32 1.442695, %v412_v15 }
 0x26d   : > { %812 = vpow2.f32 %v413_v16 }
 0x26e   : > { %814 = vpow2.f32 %v405_v19 }
 0x277   : > { %v813_v17 = vpop.eup %812 }
 0x278   : > { %716 = vmatmul.mubr.msk.f32.vlgmr.msra.gmra.mrb[0].mxu1 %vm399_vm3, %v813_v17  ;;  %v417_v18 = vsel %vm399_vm3, %v813_v17, 0.0  ;;  %v815_v20 = vpop.eup %814 }
 0x279   : > { %418 = vadd.xlane.f32.xlu1 %v417_v18  ;;  %v416_v22 = vmul.f32 %v815_v20, %v415_v21 }
 0x28a   : > { %426 = vperm.xlu1 %811, %v815_v20  }
 0x306   : > { %v419_v23 = vpop.xlane.xlu1 %418 }
 0x307   : > { %v420_v24 = vadd.f32 %v419_v23, %v416_v22 }
 0x309   : > { %422 = vst.msk [vmem:[#allocation3] sm:$0xff] %vm312_vm2, %v420_v24 }
 0x30a   : > { %v427_v28 = vpop.permute.xlu1 %426 }
 0x30b   : > { %v429_v29 = vmul.f32 %v427_v28, %v423_v27 }
 0x310   : > { %v509_v25 = vld [vmem:[#allocation3] sm:$0xff] }
 0x311   : > { %816 = vrcp.f32 %v509_v25 }
 0x31b   : > { %v817_v26 = vpop.eup %816 }
 0x31c   : > { %514 = vperm.xlu1 %811, %v817_v26  }
 0x34b   : > { %v499_v30 = vpop.f32.mrb[0].mxu1 }
 0x34c   : > { %v503_v31 = vadd.f32 %v499_v30, %v429_v29  ;;  %v717_v32 = vpop.f32.mrb[1].mxu1 }
 0x34e   : > { %504 = vst.msk [vmem:[#allocation4] sm:$0xff] %vm315_vm0, %v503_v31 }
 0x355   : > { %v511_v33 = vld [vmem:[#allocation4] sm:$0xff] }
 0x39b   : > { %v515_v34 = vpop.permute.xlu1 %514 }
 0x39c   : > { %v517_v35 = vmul.f32 %v515_v34, %v511_v33 }
 0x39e   : > { %518 = vst.msk [vmem:[%s307_s26] sm:$0xff] %vm315_vm0, %v517_v35 }
 0x39f   : > { %921 = shalt.err (!%p918_p13)
}
 0x3a0   : > { %s922_s21 = scalar_lea.hbm %s1283_s1, 128  ;;  %s926_s24 = scalar_lea.hbm %s1341_s3, 512 }
 0x3a1   : > { %p923_p12 = scmp.ne.s32.totalorder %s1283_s1, %s922_s21  ;;  %p927_p7 = scmp.lt.u32.totalorder %s1283_s1, %s1341_s3 }
 0x3a2   : > { %p928_p3 = scmp.lt.u32.totalorder %s926_s24, %s922_s21  ;;  %p930_p4 = scmp.lt.u32.totalorder %s922_s21, %s1283_s1 }
 0x3a3   : > { %p924_p6 = pnand %p923_p12, %p1372_p10 }
 0x3a4   : > { %p929_p0 = por %p928_p3, %p927_p7 }
 0x3a5   : > { %p925_p5 = pneg %p924_p6 }
 0x3a6   : > { %p931_p1 = por %p930_p4, %p929_p0 }
 0x3a8   : > { %p932_p2 = pnand %p931_p1, %p925_p5 }
 0x3aa   : > { %935 = shalt.err (!%p932_p2)
}
 0x3ab   : > { %724 = dma.vmem_to_hbm [thread:$0]  (%p1372_p10), %s1285_s9, 128, %s1283_s1, %s520_s16  }
 0x3ac PF: > { %s1373_s10 = sld [smem:[#allocation19_spill]]  ;;  %p741_p8 = scmp.ge.s32.totalorder %s1010_s19, 2 }
 0x3ad   : > { %s548_s8 = sand.u32 1, %s982_s12  }
 0x3ae   : > { %s549_s23 = scalar_lea.sflag [#allocation7], %s548_s8 }
 0x3b2   : > { %p1374_p9 = scmp.ne.s32.totalorder %s1373_s10, 0 }
 0x3b4   : > { %p737_p11 = pnand %p741_p8, %p1374_p9 }
 0x3b6   : > { %977 = dma.done.wait (!%p737_p11), %s549_s23, 128  }
 0x3b7   : > { %979 = vsyncadd (!%p737_p11), %s549_s23, 4294967168  ;;  %s22_s19 = sadd.s32 1, %s1010_s19   ;;  %s1375_s28 = sld [smem:[#allocation20_spill]] }
 0x3b8   : > { %p19_p13 = scmp.ge.s32.totalorder %s22_s19, 6   ;;  %s1376_s15 = sld [smem:[#allocation15_spill]] }
 0x3b9   : > { %s1377_s16 = sld [smem:[#allocation16_spill]]  ;;  %s1378_s17 = sld [smem:[#allocation17_spill]] }
 0x3ba   : > { %s1379_s18 = sld [smem:[#allocation18_spill]]  ;;  %s1380_s12 = smov %s986_s13 }
 0x3bb   : > { %s1381_s13 = smov %s990_s14  ;;  %21 = sbr.rel (!%p19_p13) target bundleno = 11 (0xb), region = 109 }
 0x3bd   : > { %s1382_s14 = smov %s1375_s28 }
 0x3c2   :  { %554 = vsyncpa [#allocation6], 1 }
 0x3c3   :  { %556 = vsyncpa [#allocation6 + $0x1], 1 }
 0x3c4   :  { %557 = vsyncpa [#allocation9], 1 }
 0x3c5   :  { %559 = vsyncpa [#allocation9 + $0x1], 1 }
 0x3c6   :  { %560 = vsyncpa [#allocation7], 1 }
 0x3c7   :  { %562 = vsyncpa [#allocation7 + $0x1], 1 }

</bundles_post_ra>
